<compile_context>
chip_gen: v7x
topology: tpu7x:2x2x1
jax: 0.10.0
libtpu: 0.0.40
codegen_flags: <defaults>
</compile_context>

<pallas_src>
import functools
import math

import jax
import jax.numpy as jnp
from jax.experimental import pallas as pl
from jax.experimental.pallas import tpu as pltpu

_LANES = 128
_SUBLANES = 8


def _round_up(v, m):
    return ((v + m - 1) // m) * m


def _round_down(v, m):
    return (v // m) * m


def _tpu_defaults():
    """(num_cores, max_tile_rows) tuned per TPU generation.

    num_cores=2 only where the chip actually has 2 TensorCores to shard the
    'parallel' grid axis across; max_tile_rows sized so 2 inputs x 2 pipeline
    buffers of f32 blocks stay inside the generation's scoped-VMEM default.
    """
    kind = ""
    try:
        kind = jax.devices()[0].device_kind.lower()
    except Exception:
        pass
    if "v5 lite" in kind or "v5e" in kind:
        return 1, 4096      # 16 MiB scoped VMEM -> 2 MiB f32 input blocks
    if "v6" in kind:
        return 1, 8192      # single TC, 32 MiB scoped VMEM -> 4 MiB blocks
    if "v7" in kind:
        return 2, 8192      # 2 TensorCores per chip
    if "v4" in kind or "v5" in kind:
        return 2, 4096      # megacore chips (v4 / v5p)
    return 1, 4096          # unknown backend: conservative


def _focal_loss_kernel(x_ref, t_ref, out_ref, *, gamma, tile_rows,
                       chunks_per_core, full_rows, rem_lanes):
    c = pl.program_id(0)   # core-parallel axis
    i = pl.program_id(1)   # reduction ("arbitrary") axis

    @pl.when(i == 0)
    def _():
        out_ref[...] = jnp.zeros_like(out_ref)

    x = x_ref[...].astype(jnp.float32)
    t = t_ref[...].astype(jnp.float32)

    # Shared transcendentals (targets assumed binary {0,1}):
    #   e  = exp(-|x|),  sp = log1p(e)
    #   BCE-with-logits          = max(x, 0) - x*t + sp
    #   logsigmoid(-x*(2t - 1))  = min(-(2t-1)*x, 0) - sp     (|(2t-1)*x| == |x|)
    e = jnp.exp(-jnp.abs(x))
    sp = jnp.log1p(e)
    bce = jnp.maximum(x, 0.0) - x * t + sp

    xs = x * (t * 2.0 - 1.0)
    if gamma == 2.0:
        # Fast path: modulation = sigmoid(-xs)^2 built from e; approx reciprocal
        # keeps the divide on the (otherwise idle) EUP slot.
        sig = jnp.where(xs > 0.0, e, 1.0) * pl.reciprocal(1.0 + e, approx=True)
        mod = sig * sig
    else:
        logsig = jnp.minimum(-xs, 0.0) - sp
        mod = jnp.exp(logsig * gamma)

    loss = mod * bce

    def _accum(v):
        # Sublane-reduce the chunk into the tiny resident (8, 128) per-core block:
        # pure vreg adds, no XLU, no large writeback.
        out_ref[...] += v.reshape(tile_rows // _SUBLANES, _SUBLANES, _LANES).sum(axis=0)

    base_row = (c * chunks_per_core + i) * tile_rows
    # Only the chunk(s) touching rows >= full_rows (lane padding, overhanging final
    # block, or grid overshoot) pay for the mask; interior chunks skip it entirely.
    on_boundary = base_row + tile_rows > full_rows

    @pl.when(jnp.logical_not(on_boundary))
    def _():
        _accum(loss)

    @pl.when(on_boundary)
    def _():
        # Row-index comparison (not flat element index) -> no int32 overflow risk.
        row = base_row + jax.lax.broadcasted_iota(jnp.int32, loss.shape, 0)
        valid = row < full_rows
        if rem_lanes:  # lane check only needed for the single partially-valid row
            lane = jax.lax.broadcasted_iota(jnp.int32, loss.shape, 1)
            valid = valid | ((row == full_rows) & (lane < rem_lanes))
        _accum(jnp.where(valid, loss, 0.0))


def focal_loss(logit, target, gamma=2.0, *, max_tile_rows=None, num_cores=None):
    """Pallas TPU implementation of FocalLoss.forward.

    `target` must be binary {0, 1} (any dtype). Pass logits/targets in their
    native (possibly narrow) dtypes; the kernel casts to f32 in VMEM, so a
    wrapper-side upcast would only add HBM traffic.
    """
    assert logit.shape == target.shape
    n = math.prod(logit.shape)
    assert n > 0
    # torch: 2-D -> loss.sum(dim=1).mean() == total/B ; otherwise mean() == total/numel.
    divisor = logit.shape[0] if logit.ndim == 2 else n

    auto_cores, auto_rows = _tpu_defaults()
    if num_cores is None:
        num_cores = auto_cores
    if max_tile_rows is None:
        max_tile_rows = auto_rows

    full_rows = n // _LANES           # fully-valid 128-lane rows
    rem_lanes = n % _LANES            # valid lanes of the single partial row (if any)
    rows = max(pl.cdiv(n, _LANES), _SUBLANES)   # physical rows handed to the kernel

    x = logit.reshape(-1)             # free for contiguous arrays
    t = target.reshape(-1)
    padded_n = rows * _LANES
    if padded_n != n:
        # Only taken when n is not a multiple of 128 (or n < 1024): pads by < 128
        # elements (+ up to 7 rows for tiny inputs). Lane-aligned inputs take the
        # zero-copy path: the reshape below is free and no extra HBM pass happens.
        x = jnp.pad(x, (0, padded_n - n))
        t = jnp.pad(t, (0, padded_n - n))
    x = x.reshape(rows, _LANES)
    t = t.reshape(rows, _LANES)

    nc = max(1, min(int(num_cores), rows // _SUBLANES))
    tile_rows = min(_round_up(pl.cdiv(rows, nc), _SUBLANES),
                    _round_down(rows, _SUBLANES),
                    max(_round_down(int(max_tile_rows), _SUBLANES), _SUBLANES))
    total_chunks = pl.cdiv(rows, tile_rows)
    nc = max(1, min(nc, total_chunks))
    chunks_per_core = pl.cdiv(total_chunks, nc)

    last_block = total_chunks - 1
    if nc * chunks_per_core == total_chunks:
        in_idx = lambda c, i: (c * chunks_per_core + i, 0)
    else:
        # Grid overshoots by < nc chunks; clamp so no DMA reads a fully-OOB block.
        # (The overshoot chunks are masked to zero inside the kernel.)
        in_idx = lambda c, i: (jnp.minimum(c * chunks_per_core + i, last_block), 0)

    kernel = functools.partial(
        _focal_loss_kernel, gamma=float(gamma), tile_rows=tile_rows,
        chunks_per_core=chunks_per_core, full_rows=full_rows, rem_lanes=rem_lanes)

    # VMEM budget: 2 inputs x 2 pipeline buffers x (tile_rows*128*4B) + tiny output
    # block -> <= 16 MiB on v6e/v7x defaults, <= 8 MiB on v5e; no vmem_limit override.
    partial_sums = pl.pallas_call(
        kernel,
        out_shape=jax.ShapeDtypeStruct((nc * _SUBLANES, _LANES), jnp.float32),
        grid_spec=pltpu.PrefetchScalarGridSpec(
            num_scalar_prefetch=0,
            grid=(nc, chunks_per_core),
            in_specs=[pl.BlockSpec((tile_rows, _LANES), in_idx),
                      pl.BlockSpec((tile_rows, _LANES), in_idx)],
            out_specs=pl.BlockSpec((_SUBLANES, _LANES), lambda c, i: (c, 0)),
        ),
        compiler_params=pltpu.CompilerParams(
            dimension_semantics=("parallel", "arbitrary")),
    )(x, t)

    # Tiny (<= 2K element) final reduction + normalization outside the kernel.
    return partial_sums.sum() / jnp.float32(divisor)


def focal_loss_ref(logit, target, gamma=2.0):
    """Pure-JAX reference mirroring the PyTorch forward."""
    logit = logit.astype(jnp.float32)
    target = target.astype(jnp.float32)
    max_val = jnp.maximum(-logit, 0.0)
    loss = (logit - logit * target + max_val
            + jnp.log(jnp.exp(-max_val) + jnp.exp(-logit - max_val)))
    invprobs = jax.nn.log_sigmoid(-logit * (target * 2.0 - 1.0))
    loss = jnp.exp(invprobs * gamma) * loss
    if loss.ndim == 2:
        loss = loss.sum(axis=1)
    return loss.mean()


if __name__ == "__main__":
    key = jax.random.PRNGKey(0)
    k1, k2, k3, k4 = jax.random.split(key, 4)

    # 1) Lane-aligned multi-label classification shape (zero-copy path, no mask).
    B, C = 16, 64
    logit = jax.random.normal(k1, (B, C), dtype=jnp.float32) * 2.0
    target = (jax.random.uniform(k2, (B, C)) > 0.5).astype(jnp.float32)

    out = jax.block_until_ready(focal_loss(logit, target, gamma=2.0))
    ref = focal_loss_ref(logit, target, gamma=2.0)
    # gamma==2 fast path uses approx reciprocal -> slightly looser tolerance.
    assert jnp.allclose(out, ref, rtol=1e-2, atol=1e-3), (out, ref)

    out_g1 = jax.block_until_ready(focal_loss(logit, target, gamma=1.0))
    ref_g1 = focal_loss_ref(logit, target, gamma=1.0)
    assert jnp.allclose(out_g1, ref_g1, rtol=1e-5, atol=1e-5), (out_g1, ref_g1)

    # 2) Row-ragged but lane-aligned shape: overhanging final block handled by the
    #    gated in-kernel mask, still no padding copy.
    B1, C1 = 16, 120   # n = 1920 = 15 * 128
    logit1 = jax.random.normal(k3, (B1, C1), dtype=jnp.float32) * 2.0
    target1 = (jax.random.uniform(k4, (B1, C1)) > 0.5).astype(jnp.float32)
    out1 = jax.block_until_ready(focal_loss(logit1, target1, gamma=2.0))
    ref1 = focal_loss_ref(logit1, target1, gamma=2.0)
    assert jnp.allclose(out1, ref1, rtol=1e-2, atol=1e-3), (out1, ref1)

    # 3) Lane-ragged tiny shape with bf16 logits kept narrow through the boundary
    #    (minimal pad + lane-level mask on the single boundary chunk).
    B2, C2 = 10, 50    # n = 500
    logit2 = (jax.random.normal(k1, (B2, C2), dtype=jnp.float32) * 2.0).astype(jnp.bfloat16)
    target2 = (jax.random.uniform(k2, (B2, C2)) > 0.5).astype(jnp.float32)
    out2 = jax.block_until_ready(focal_loss(logit2, target2, gamma=2.0))
    ref2 = focal_loss_ref(logit2.astype(jnp.float32), target2, gamma=2.0)
    assert jnp.allclose(out2, ref2, rtol=1e-2, atol=1e-3), (out2, ref2)

    print("KERNEL_OK")
</pallas_src>

<mosaic_0001>
module attributes {stable_mosaic.version = 11 : i64} {
  func.func @_focal_loss_kernel(%arg0: i32, %arg1: i32, %arg2: memref<8x128xf32, #tpu.memory_space<vmem>>, %arg3: memref<8x128xf32, #tpu.memory_space<vmem>>, %arg4: memref<8x128xf32, #tpu.memory_space<vmem>>) attributes {dimension_semantics = [#tpu.dimension_semantics<parallel>, #tpu.dimension_semantics<arbitrary>], iteration_bounds = array<i64: 1, 1>, scalar_prefetch = 0 : i64, scratch_operands = 0 : i64, tpu.core_type = #tpu.core_type<tc>, window_params = [{transform_indices = @transform_0, window_bounds = array<i64: 8, 128>}, {transform_indices = @transform_1, window_bounds = array<i64: 8, 128>}, {transform_indices = @transform_2, window_bounds = array<i64: 8, 128>}]} {
    %c0_i32 = arith.constant 0 : i32
    %0 = arith.cmpi eq, %arg1, %c0_i32 : i32
    %1 = arith.extui %0 : i1 to i32
    %c0_i32_0 = arith.constant 0 : i32
    %2 = arith.cmpi ne, %1, %c0_i32_0 : i32
    scf.if %2 {
      %cst_14 = arith.constant 0.000000e+00 : f32
      %40 = vector.broadcast %cst_14 : f32 to vector<8x128xf32>
      %c0_15 = arith.constant 0 : index
      %c0_16 = arith.constant 0 : index
      %41 = vector.load %arg4[%c0_15, %c0_16] : memref<8x128xf32, #tpu.memory_space<vmem>>, vector<8x128xf32>
      tpu.vector_store %arg4[%c0_15, %c0_16], %40 {strides = array<i32>} : memref<8x128xf32, #tpu.memory_space<vmem>>, vector<8x128xf32>,
    } else {
    }
    %c0 = arith.constant 0 : index
    %c0_1 = arith.constant 0 : index
    %3 = vector.load %arg2[%c0, %c0_1] : memref<8x128xf32, #tpu.memory_space<vmem>>, vector<8x128xf32>
    %c0_2 = arith.constant 0 : index
    %c0_3 = arith.constant 0 : index
    %4 = vector.load %arg3[%c0_2, %c0_3] : memref<8x128xf32, #tpu.memory_space<vmem>>, vector<8x128xf32>
    %5 = math.absf %3 : vector<8x128xf32>
    %cst = arith.constant 0.000000e+00 : f32
    %6 = vector.broadcast %cst : f32 to vector<8x128xf32>
    %7 = arith.subf %6, %5 : vector<8x128xf32>
    %8 = math.exp %7 : vector<8x128xf32>
    %9 = math.log1p %8 : vector<8x128xf32>
    %cst_4 = arith.constant 0.000000e+00 : f32
    %10 = vector.broadcast %cst_4 : f32 to vector<8x128xf32>
    %11 = arith.maximumf %3, %10 : vector<8x128xf32>
    %12 = arith.mulf %3, %4 : vector<8x128xf32>
    %13 = arith.subf %11, %12 : vector<8x128xf32>
    %14 = arith.addf %13, %9 : vector<8x128xf32>
    %cst_5 = arith.constant 2.000000e+00 : f32
    %15 = vector.broadcast %cst_5 : f32 to vector<8x128xf32>
    %16 = arith.mulf %4, %15 : vector<8x128xf32>
    %cst_6 = arith.constant 1.000000e+00 : f32
    %17 = vector.broadcast %cst_6 : f32 to vector<8x128xf32>
    %18 = arith.subf %16, %17 : vector<8x128xf32>
    %19 = arith.mulf %3, %18 : vector<8x128xf32>
    %cst_7 = arith.constant 0.000000e+00 : f32
    %20 = vector.broadcast %cst_7 : f32 to vector<8x128xf32>
    %21 = arith.cmpf ogt, %19, %20 : vector<8x128xf32>
    %cst_8 = arith.constant 1.000000e+00 : f32
    %22 = vector.broadcast %cst_8 : f32 to vector<8x128xf32>
    %23 = arith.select %21, %8, %22 : vector<8x128xi1>, vector<8x128xf32>
    %cst_9 = arith.constant 1.000000e+00 : f32
    %24 = vector.broadcast %cst_9 : f32 to vector<8x128xf32>
    %25 = arith.addf %24, %8 : vector<8x128xf32>
    %26 = tpu.reciprocal %25 {approx = true} : vector<8x128xf32> -> vector<8x128xf32>
    %27 = arith.mulf %23, %26 : vector<8x128xf32>
    %28 = arith.mulf %27, %27 : vector<8x128xf32>
    %29 = arith.mulf %28, %14 : vector<8x128xf32>
    %c1_i32 = arith.constant 1 : i32
    %30 = arith.muli %arg0, %c1_i32 : i32
    %31 = arith.addi %30, %arg1 : i32
    %c8_i32 = arith.constant 8 : i32
    %32 = arith.muli %31, %c8_i32 : i32
    %c8_i32_10 = arith.constant 8 : i32
    %33 = arith.addi %32, %c8_i32_10 : i32
    %c8_i32_11 = arith.constant 8 : i32
    %34 = arith.cmpi sgt, %33, %c8_i32_11 : i32
    %true = arith.constant true
    %35 = arith.xori %34, %true : i1
    %36 = arith.extui %35 : i1 to i32
    %c0_i32_12 = arith.constant 0 : i32
    %37 = arith.cmpi ne, %36, %c0_i32_12 : i32
    scf.if %37 {
      %c0_14 = arith.constant 0 : index
      %c0_15 = arith.constant 0 : index
      %40 = vector.load %arg4[%c0_14, %c0_15] : memref<8x128xf32, #tpu.memory_space<vmem>>, vector<8x128xf32>
      %41 = vector.shape_cast %29 : vector<8x128xf32> to vector<1x8x128xf32>
      %cst_16 = arith.constant dense<0.000000e+00> : vector<8x128xf32>
      %42 = vector.multi_reduction <add>, %41, %cst_16 [0] : vector<1x8x128xf32> to vector<8x128xf32>
      %43 = arith.addf %40, %42 : vector<8x128xf32>
      %c0_17 = arith.constant 0 : index
      %c0_18 = arith.constant 0 : index
      %44 = vector.load %arg4[%c0_17, %c0_18] : memref<8x128xf32, #tpu.memory_space<vmem>>, vector<8x128xf32>
      tpu.vector_store %arg4[%c0_17, %c0_18], %43 {strides = array<i32>} : memref<8x128xf32, #tpu.memory_space<vmem>>, vector<8x128xf32>,
    } else {
    }
    %38 = arith.extui %34 : i1 to i32
    %c0_i32_13 = arith.constant 0 : i32
    %39 = arith.cmpi ne, %38, %c0_i32_13 : i32
    scf.if %39 {
      %40 = tpu.iota {dimensions = array<i32: 0>} : vector<8x128xi32>
      %41 = vector.broadcast %32 : i32 to vector<8x128xi32>
      %42 = arith.addi %41, %40 : vector<8x128xi32>
      %c8_i32_14 = arith.constant 8 : i32
      %43 = vector.broadcast %c8_i32_14 : i32 to vector<8x128xi32>
      %44 = arith.cmpi slt, %42, %43 : vector<8x128xi32>
      %cst_15 = arith.constant 0.000000e+00 : f32
      %45 = vector.broadcast %cst_15 : f32 to vector<8x128xf32>
      %46 = arith.select %44, %29, %45 : vector<8x128xi1>, vector<8x128xf32>
      %c0_16 = arith.constant 0 : index
      %c0_17 = arith.constant 0 : index
      %47 = vector.load %arg4[%c0_16, %c0_17] : memref<8x128xf32, #tpu.memory_space<vmem>>, vector<8x128xf32>
      %48 = vector.shape_cast %46 : vector<8x128xf32> to vector<1x8x128xf32>
      %cst_18 = arith.constant dense<0.000000e+00> : vector<8x128xf32>
      %49 = vector.multi_reduction <add>, %48, %cst_18 [0] : vector<1x8x128xf32> to vector<8x128xf32>
      %50 = arith.addf %47, %49 : vector<8x128xf32>
      %c0_19 = arith.constant 0 : index
      %c0_20 = arith.constant 0 : index
      %51 = vector.load %arg4[%c0_19, %c0_20] : memref<8x128xf32, #tpu.memory_space<vmem>>, vector<8x128xf32>
      tpu.vector_store %arg4[%c0_19, %c0_20], %50 {strides = array<i32>} : memref<8x128xf32, #tpu.memory_space<vmem>>, vector<8x128xf32>,
    } else {
    }
    return
  }
  func.func @transform_0(%arg0: i32, %arg1: i32) -> (i32, i32) {
    %c1_i32 = arith.constant 1 : i32
    %0 = arith.muli %arg0, %c1_i32 : i32
    %1 = arith.addi %0, %arg1 : i32
    %c0_i32 = arith.constant 0 : i32
    %c0_i32_0 = arith.constant 0 : i32
    return %1, %c0_i32 : i32, i32
  }
  func.func @transform_1(%arg0: i32, %arg1: i32) -> (i32, i32) {
    %c1_i32 = arith.constant 1 : i32
    %0 = arith.muli %arg0, %c1_i32 : i32
    %1 = arith.addi %0, %arg1 : i32
    %c0_i32 = arith.constant 0 : i32
    %c0_i32_0 = arith.constant 0 : i32
    return %1, %c0_i32 : i32, i32
  }
  func.func @transform_2(%arg0: i32, %arg1: i32) -> (i32, i32) {
    %c0_i32 = arith.constant 0 : i32
    %c0_i32_0 = arith.constant 0 : i32
    return %arg0, %c0_i32 : i32, i32
  }
}

</mosaic_0001>

<bundles_post_ra>
// kernel: tpu_custom_call.1
= control target key start
LH: loop header
LB: loop body
LE: loop exit
PB: predicated region body
PF: predicated region fallthrough
CT: control target
= control target key end

     0   :  { %7 = vsyncpa [#allocation3], 0  ;;  %s256_s0 = inlined_call_operand.hbm [shape: f32[8,128], index: 0, kind: input, shape index: {}]   ;;  %s257_s1 = inlined_call_operand.hbm [shape: f32[8,128], index: 1, kind: input, shape index: {}]   ;;  %s258_s2 = inlined_call_operand.hbm [shape: f32[8,128], index: 2, kind: output, shape index: {}]  }
   0x1   :  { %8 = vsyncpa [#allocation6], 0 }
   0x2   :  { %9 = vsyncpa [#allocation4], 0  ;;  %s202_s9 = smov [#allocation2]   ;;  %s203_s11 = smov [#allocation5]  }
   0x3   :  { %s19_s10 = sshll.u32 %s202_s9, 4  ;;  %s32_s12 = sshll.u32 %s203_s11, 4  ;;  %s20_s10 = int_to_ptr.vmem [resolvable:$true] %s19_s10  ;;  %s33_s12 = int_to_ptr.vmem [resolvable:$true] %s32_s12 }
   0x4   :  { %s130_s15 = scalar_lea.hbm %s256_s0, 128 }
   0x5   :  { %p131_p0 = scmp.ne.s32.totalorder %s256_s0, %s130_s15  ;;  %p134_p1 = scmp.lt.u32.totalorder %s130_s15, %s256_s0 }
   0x7   :  { %p136_p2 = pnand %p134_p1, %p131_p0 }
   0x9   :  { %139 = shalt.err (!%p136_p2)
}
   0xa   :  { %s140_s20 = scalar_lea.vmem %s20_s10, 128  ;;  %p145_p4 = scmp.lt.s32.totalorder %s20_s10, %s20_s10 }
   0xb   :  { %p141_p3 = scmp.ne.s32.totalorder %s20_s10, %s140_s20  ;;  %p146_p5 = scmp.lt.s32.totalorder %s140_s20, %s140_s20 }
   0xd   :  { %p147_p6 = por %p146_p5, %p145_p4 }
   0xf   :  { %p148_p7 = pnand %p147_p6, %p141_p3 }
  0x11   :  { %151 = shalt.err (!%p148_p7)
}
  0x12   :  { %22 = dma.hbm_to_vmem [thread:$0]  %s256_s0, 128, %s20_s10, [#allocation3]  }
  0x13   :  { %s152_s25 = scalar_lea.hbm %s257_s1, 128 }
  0x14   :  { %p153_p8 = scmp.ne.s32.totalorder %s257_s1, %s152_s25  ;;  %p156_p9 = scmp.lt.u32.totalorder %s152_s25, %s257_s1 }
  0x16   :  { %p158_p10 = pnand %p156_p9, %p153_p8 }
  0x18   :  { %161 = shalt.err (!%p158_p10)
}
  0x19   :  { %s162_s30 = scalar_lea.vmem %s33_s12, 128  ;;  %p167_p12 = scmp.lt.s32.totalorder %s33_s12, %s33_s12 }
  0x1a   :  { %p163_p11 = scmp.ne.s32.totalorder %s33_s12, %s162_s30  ;;  %p168_p13 = scmp.lt.s32.totalorder %s162_s30, %s162_s30 }
  0x1c   :  { %p169_p0 = por %p168_p13, %p167_p12 }
  0x1e   :  { %p170_p1 = pnand %p169_p0, %p163_p11 }
  0x20   :  { %173 = shalt.err (!%p170_p1)
}
  0x21   :  { %35 = dma.hbm_to_vmem [thread:$0]  %s257_s1, 128, %s33_s12, [#allocation6]  }
  0x22   :  { %196 = dma.done.wait [#allocation3], 128  }
  0x23   :  { %197 = vsyncadd [#allocation3], 4294967168 }
  0x24   :  { %198 = dma.done.wait [#allocation6], 128  }
  0x25   :  { %199 = vsyncadd [#allocation6], 4294967168  ;;  %v49_v0 = vld [vmem:[#allocation2] sm:$0xff]  ;;  %v50_v4 = vld [vmem:[#allocation5] sm:$0xff]  ;;  %s204_s1 = smov [#allocation7]  }
  0x26   :  { %v51_v1 = vand.u32 2147483647, %v49_v0  ;;  %v68_v5 = vmul.f32 2.0, %v50_v4  ;;  %v64_v13 = vmax.f32 %v49_v0, 0.0  ;;  %v65_v14 = vmul.f32 %v50_v4, %v49_v0  ;;  %s109_s4 = sshll.u32 %s204_s1, 4  ;;  %s110_s4 = int_to_ptr.vmem [resolvable:$true] %s109_s4 }
  0x27   :  { %s174_s5 = scalar_lea.vmem %s110_s4, 128  ;;  %p179_p3 = scmp.lt.s32.totalorder %s110_s4, %s110_s4 }
  0x28   :  { %v52_v2 = vsub.f32 0.0, %v51_v1  ;;  %v119_v8 = vadd.f32 -1.0, %v68_v5  ;;  %v66_v18 = vsub.f32 %v64_v13, %v65_v14  ;;  %p175_p2 = scmp.ne.s32.totalorder %s110_s4, %s174_s5  ;;  %p180_p4 = scmp.lt.s32.totalorder %s174_s5, %s174_s5 }
  0x2a   :  { %v53_v3 = vmul.f32 1.442695, %v52_v2  ;;  %v70_v10 = vmul.f32 %v119_v8, %v49_v0  ;;  %p181_p5 = por %p180_p4, %p179_p3 }
  0x2c   :  { %124 = vpow2.f32 %v53_v3  ;;  %vm71_vm0 = vcmp.gt.f32.partialorder %v70_v10, 0.0  ;;  %p182_p6 = pnand %p181_p5, %p175_p2 }
  0x36   :  { %v125_v6 = vpop.eup %124 }
  0x37   :  { %v55_v7 = vadd.f32 1.0, %v125_v6  ;;  %v58_v9 = vmul.f32 -0.5, %v125_v6  ;;  %v61_v12 = vand.u32 2147483647, %v125_v6  ;;  %v72_v16 = vsel %vm71_vm0, %v125_v6, 1.0 }
  0x39   :  { %126 = vlog2.f32 %v55_v7  ;;  %v59_v11 = vadd.f32 1.0, %v58_v9  ;;  %vm62_vm1 = vcmp.lt.f32.partialorder %v61_v12, 0.0004427343 }
  0x3a   :  { %128 = vrcp.f32 %v55_v7 }
  0x3b   :  { %v60_v15 = vmul.f32 %v125_v6, %v59_v11 }
  0x43   :  { %v127_v17 = vpop.eup %126 }
  0x44   :  { %v129_v19 = vpop.eup %128  ;;  %v57_v20 = vmul.f32 0.6931472, %v127_v17 }
  0x45   :  { %v75_v21 = vmul.f32 %v129_v19, %v72_v16 }
  0x46   :  { %v63_v22 = vsel %vm62_vm1, %v60_v15, %v57_v20 }
  0x47   :  { %v67_v23 = vadd.f32 %v66_v18, %v63_v22  ;;  %v76_v24 = vmul.f32 %v75_v21, %v75_v21 }
  0x49   :  { %v77_v25 = vmul.f32 %v76_v24, %v67_v23 }
  0x4b   :  { %89 = vst [vmem:[#allocation7] sm:$0xff] %v77_v25 }
  0x4c   :  { %185 = shalt.err (!%p182_p6)
}
  0x4d   :  { %s186_s8 = scalar_lea.hbm %s258_s2, 128 }
  0x4e   :  { %p187_p7 = scmp.ne.s32.totalorder %s258_s2, %s186_s8  ;;  %p190_p8 = scmp.lt.u32.totalorder %s186_s8, %s258_s2 }
  0x50   :  { %p192_p9 = pnand %p190_p8, %p187_p7 }
  0x52   :  { %195 = shalt.err (!%p192_p9)
}
  0x53   :  { %112 = dma.vmem_to_hbm [thread:$0]  %s110_s4, 128, %s258_s2, [#allocation4]  }
  0x54   :  { %200 = dma.done.wait [#allocation4], 128  }
  0x55   :  { %201 = vsyncadd [#allocation4], 4294967168 }
  0x56   :  { %116 = vsyncpa [#allocation3], 1 }
  0x57   :  { %117 = vsyncpa [#allocation6], 1 }
  0x58   :  { %118 = vsyncpa [#allocation4], 1 }

</bundles_post_ra>
